<compile_context>
chip_gen: v6e
topology: v6e:2x2x1
jax: 0.10.0
libtpu: 0.0.40
codegen_flags: <defaults>
</compile_context>

<pallas_src>
import jax
import jax.numpy as jnp
from jax.experimental import pallas as pl
from jax.experimental.pallas import tpu as pltpu


def outconv_kernel(x_ref, w_ref, b_ref, o_ref):
    # x_ref: (BN, C, THW) in VMEM
    # w_ref: (C,) in SMEM, b_ref: (1,) in SMEM
    # o_ref: (BN, THW) in VMEM
    C = x_ref.shape[1]
    # Unrolled channel reduction on the VPU: acc[n, hw] = sum_c w[c] * x[n, c, hw]
    acc = x_ref[:, 0, :].astype(jnp.float32) * w_ref[0]
    for c in range(1, C):
        acc = acc + x_ref[:, c, :].astype(jnp.float32) * w_ref[c]
    o_ref[...] = (acc + b_ref[0]).astype(o_ref.dtype)


def _pick_spatial_tile(hw, max_lanes=2048):
    """Largest multiple of 128 that divides hw, capped; full hw if not 128-aligned."""
    if hw % 128 != 0:
        return hw  # full-extent block (lane-padded but legal)
    best = 128
    t = 128
    while t <= min(hw, max_lanes):
        if hw % t == 0:
            best = t
        t += 128
    return best


def _pick_batch_tile(n):
    """8-aligned batch tile when possible, else full N (legal: equals array dim)."""
    if n % 8 == 0:
        return 8
    return n


def outconv_forward(x, weight, bias):
    """x: (N, C, H, W); weight: (1, C, 1, 1); bias: (1,). Returns (N, 1, H, W)."""
    N, C, H, W = x.shape
    HW = H * W

    x3d = x.reshape(N, C, HW)                      # contiguous reshape, free
    w1d = weight.reshape(C).astype(jnp.float32)    # scalars for SMEM
    b1d = bias.reshape(1).astype(jnp.float32)

    thw = _pick_spatial_tile(HW)
    bn = _pick_batch_tile(N)
    grid = (N // bn, HW // thw)

    out2d = pl.pallas_call(
        outconv_kernel,
        out_shape=jax.ShapeDtypeStruct((N, HW), x.dtype),
        grid_spec=pltpu.PrefetchScalarGridSpec(
            num_scalar_prefetch=0,
            grid=grid,
            in_specs=[
                # Lane-dense spatial tiles, full (small) channel dim per block.
                pl.BlockSpec((bn, C, thw), lambda i, j: (i, 0, j)),
                # Weights / bias as SMEM scalars (no VMEM tile, no re-DMA).
                pl.BlockSpec(memory_space=pltpu.MemorySpace.SMEM),
                pl.BlockSpec(memory_space=pltpu.MemorySpace.SMEM),
            ],
            out_specs=pl.BlockSpec((bn, thw), lambda i, j: (i, j)),
        ),
        compiler_params=pltpu.CompilerParams(
            dimension_semantics=("parallel", "parallel")),
    )(x3d, w1d, b1d)

    return out2d.reshape(N, 1, H, W)


def reference_forward(x, weight, bias):
    # Plain-JAX reference of a 1x1 conv (NCHW).
    return jnp.einsum("nchw,oc->nohw", x, weight.reshape(1, -1)) + bias.reshape(1, 1, 1, 1)


if __name__ == "__main__":
    # TODO(synk): spectral_norm branch (weight normalization by leading singular
    # value) is a parameter-reparameterization, not a forward-pass op; only the
    # plain Conv2d path is implemented here.
    key = jax.random.PRNGKey(0)
    k_x, k_w, k_b = jax.random.split(key, 3)

    N, C, H, W = 2, 4, 16, 16
    x = jax.random.normal(k_x, (N, C, H, W), dtype=jnp.float32)

    # Deterministic init matching nn.Conv2d(in_c, 1, 1) parameter shapes:
    # weight (1, C, 1, 1), bias (1,), uniform(-1/sqrt(C), 1/sqrt(C)) like torch default.
    bound = 1.0 / (C ** 0.5)
    weight = jax.random.uniform(k_w, (1, C, 1, 1), minval=-bound, maxval=bound,
                                dtype=jnp.float32)
    bias = jax.random.uniform(k_b, (1,), minval=-bound, maxval=bound,
                              dtype=jnp.float32)

    out = outconv_forward(x, weight, bias)
    jax.block_until_ready(out)

    ref = reference_forward(x, weight, bias)
    assert out.shape == (N, 1, H, W)
    assert jnp.allclose(out, ref, atol=1e-5, rtol=1e-5)

    print("KERNEL_OK")
</pallas_src>

<mosaic_0001>
module attributes {stable_mosaic.version = 11 : i64} {
  func.func @outconv_kernel(%arg0: i32, %arg1: i32, %arg2: memref<2x4x256xf32, #tpu.memory_space<vmem>>, %arg3: memref<4xf32, #tpu.memory_space<smem>>, %arg4: memref<1xf32, #tpu.memory_space<smem>>, %arg5: memref<2x256xf32, #tpu.memory_space<vmem>>) attributes {dimension_semantics = [#tpu.dimension_semantics<parallel>, #tpu.dimension_semantics<parallel>], iteration_bounds = array<i64: 1, 1>, scalar_prefetch = 0 : i64, scratch_operands = 0 : i64, tpu.core_type = #tpu.core_type<tc>, window_params = [{transform_indices = @transform_0, window_bounds = array<i64: 2, 4, 256>}, {transform_indices = @transform_1, window_bounds = array<i64: 4>}, {transform_indices = @transform_2, window_bounds = array<i64: 1>}, {transform_indices = @transform_3, window_bounds = array<i64: 2, 256>}]} {
    %c0 = arith.constant 0 : index
    %c0_0 = arith.constant 0 : index
    %c0_1 = arith.constant 0 : index
    %0 = vector.load %arg2[%c0, %c0_0, %c0_1] : memref<2x4x256xf32, #tpu.memory_space<vmem>>, vector<2x1x256xf32>
    %1 = vector.shape_cast %0 : vector<2x1x256xf32> to vector<2x256xf32>
    %c0_2 = arith.constant 0 : index
    %2 = memref.load %arg3[%c0_2] : memref<4xf32, #tpu.memory_space<smem>>
    %3 = vector.broadcast %2 : f32 to vector<2x256xf32>
    %4 = arith.mulf %1, %3 : vector<2x256xf32>
    %c0_3 = arith.constant 0 : index
    %c1 = arith.constant 1 : index
    %c0_4 = arith.constant 0 : index
    %5 = vector.load %arg2[%c0_3, %c1, %c0_4] : memref<2x4x256xf32, #tpu.memory_space<vmem>>, vector<2x1x256xf32>
    %6 = vector.shape_cast %5 : vector<2x1x256xf32> to vector<2x256xf32>
    %c1_5 = arith.constant 1 : index
    %7 = memref.load %arg3[%c1_5] : memref<4xf32, #tpu.memory_space<smem>>
    %8 = vector.broadcast %7 : f32 to vector<2x256xf32>
    %9 = arith.mulf %6, %8 : vector<2x256xf32>
    %10 = arith.addf %4, %9 : vector<2x256xf32>
    %c0_6 = arith.constant 0 : index
    %c2 = arith.constant 2 : index
    %c0_7 = arith.constant 0 : index
    %11 = vector.load %arg2[%c0_6, %c2, %c0_7] : memref<2x4x256xf32, #tpu.memory_space<vmem>>, vector<2x1x256xf32>
    %12 = vector.shape_cast %11 : vector<2x1x256xf32> to vector<2x256xf32>
    %c2_8 = arith.constant 2 : index
    %13 = memref.load %arg3[%c2_8] : memref<4xf32, #tpu.memory_space<smem>>
    %14 = vector.broadcast %13 : f32 to vector<2x256xf32>
    %15 = arith.mulf %12, %14 : vector<2x256xf32>
    %16 = arith.addf %10, %15 : vector<2x256xf32>
    %c0_9 = arith.constant 0 : index
    %c3 = arith.constant 3 : index
    %c0_10 = arith.constant 0 : index
    %17 = vector.load %arg2[%c0_9, %c3, %c0_10] : memref<2x4x256xf32, #tpu.memory_space<vmem>>, vector<2x1x256xf32>
    %18 = vector.shape_cast %17 : vector<2x1x256xf32> to vector<2x256xf32>
    %c3_11 = arith.constant 3 : index
    %19 = memref.load %arg3[%c3_11] : memref<4xf32, #tpu.memory_space<smem>>
    %20 = vector.broadcast %19 : f32 to vector<2x256xf32>
    %21 = arith.mulf %18, %20 : vector<2x256xf32>
    %22 = arith.addf %16, %21 : vector<2x256xf32>
    %c0_12 = arith.constant 0 : index
    %23 = memref.load %arg4[%c0_12] : memref<1xf32, #tpu.memory_space<smem>>
    %24 = vector.broadcast %23 : f32 to vector<2x256xf32>
    %25 = arith.addf %22, %24 : vector<2x256xf32>
    %c0_13 = arith.constant 0 : index
    %c0_14 = arith.constant 0 : index
    %26 = vector.load %arg5[%c0_13, %c0_14] : memref<2x256xf32, #tpu.memory_space<vmem>>, vector<2x256xf32>
    tpu.vector_store %arg5[%c0_13, %c0_14], %25 {strides = array<i32>} : memref<2x256xf32, #tpu.memory_space<vmem>>, vector<2x256xf32>,
    return
  }
  func.func @transform_0(%arg0: i32, %arg1: i32) -> (i32, i32, i32) {
    %c0_i32 = arith.constant 0 : i32
    %c0_i32_0 = arith.constant 0 : i32
    return %arg0, %c0_i32, %arg1 : i32, i32, i32
  }
  func.func @transform_1(%arg0: i32, %arg1: i32) -> i32 {
    %c0_i32 = arith.constant 0 : i32
    %c0_i32_0 = arith.constant 0 : i32
    return %c0_i32 : i32
  }
  func.func @transform_2(%arg0: i32, %arg1: i32) -> i32 {
    %c0_i32 = arith.constant 0 : i32
    %c0_i32_0 = arith.constant 0 : i32
    return %c0_i32 : i32
  }
  func.func @transform_3(%arg0: i32, %arg1: i32) -> (i32, i32) {
    %c0_i32 = arith.constant 0 : i32
    return %arg0, %arg1 : i32, i32
  }
}

</mosaic_0001>

<bundles_post_ra>
// kernel: tpu_custom_call.1
= control target key start
LH: loop header
LB: loop body
LE: loop exit
PB: predicated region body
PF: predicated region fallthrough
CT: control target
= control target key end

     0   :  { %9 = vsyncpa [#allocation4], 0  ;;  %s216_s0 = inlined_call_operand.hbm [shape: f32[2,4,256], index: 0, kind: input, shape index: {}]   ;;  %s217_s1 = inlined_call_operand.vmem [shape: f32[4], index: 1, kind: input, shape index: {}]   ;;  %s218_s2 = inlined_call_operand.<no memory space> [shape: f32[1], index: 2, kind: input, shape index: {}]   ;;  %s219_s3 = inlined_call_operand.hbm [shape: f32[2,256], index: 3, kind: output, shape index: {}]  }
   0x1   :  { %10 = vsyncpa [#allocation6], 0 }
   0x2   :  { %11 = vsyncpa [#allocation5], 0  ;;  %s179_s12 = smov [#allocation3]   ;;  %s30_s16 = sshll.u32 %s217_s1, 4  ;;  %s31_s16 = int_to_ptr.vmem [resolvable:$true] %s30_s16 }
   0x3   :  { %s17_s13 = sshll.u32 %s179_s12, 4  ;;  %s18_s13 = int_to_ptr.vmem [resolvable:$true] %s17_s13 }
   0x4   :  { %s129_s17 = scalar_lea.vmem %s18_s13, 256  ;;  %p134_p1 = scmp.lt.s32.totalorder %s18_s13, %s18_s13 }
   0x5   :  { %p130_p0 = scmp.ne.s32.totalorder %s18_s13, %s129_s17  ;;  %p135_p2 = scmp.lt.s32.totalorder %s129_s17, %s129_s17 }
   0x7   :  { %p136_p3 = por %p135_p2, %p134_p1 }
   0x9   :  { %p137_p4 = pnand %p136_p3, %p130_p0 }
   0xb   :  { %140 = shalt.err (!%p137_p4)
}
   0xc   :  { %s180_s18 = smov 128   ;;  %s181_s19 = smov 8  }
   0xd   :  { %23 = dma.hbm_to_vmem [thread:$0]  %s216_s0, 256, %s18_s13, [#allocation4], %s180_s18, %s180_s18, %s181_s19  }
   0xe   :  { %s141_s22 = scalar_lea.vmem %s31_s16, 16  ;;  %p146_p6 = scmp.lt.s32.totalorder %s31_s16, %s31_s16 }
   0xf   :  { %p142_p5 = scmp.ne.s32.totalorder %s31_s16, %s141_s22  ;;  %p147_p7 = scmp.lt.s32.totalorder %s141_s22, %s141_s22 }
  0x11   :  { %p148_p8 = por %p147_p7, %p146_p6 }
  0x13   :  { %p149_p9 = pnand %p148_p8, %p142_p5 }
  0x15   :  { %152 = shalt.err (!%p149_p9)
}
  0x16   :  { %s182_s1 = smov [#allocation7]  }
  0x17   :  { %33 = dma.vmem_to_smem %s31_s16, 16, %s182_s1, [#allocation6]  }
  0x18   :  { %173 = dma.done.wait [#allocation4], 256  }
  0x19   :  { %174 = vsyncadd [#allocation4], 4294967040 }
  0x1a   :  { %175 = dma.done.wait [#allocation6], 16  }
  0x1b   :  { %176 = vsyncadd [#allocation6], 4294967280 }
  0x1c   :  { %42 = sfence }
  0x1d   :  { %s46_s23 = sld [smem:[#allocation7]]  ;;  %v43_v0 = vld [vmem:[#allocation3] ss:$4 sm:$0x3]  ;;  %v81_v24 = vstv %s218_s2  ;;  %s183_s28 = smov [#allocation8]  }
  0x1e   :  { %s112_s24 = sld [smem:[#allocation7 + $0x1]]  ;;  %v45_v1 = vld [vmem:[#allocation3 + $0x8] ss:$4 sm:$0x3]  ;;  %s102_s29 = sshll.u32 %s183_s28, 4  ;;  %s103_s29 = int_to_ptr.vmem [resolvable:$true] %s102_s29 }
  0x1f   :  { %s113_s25 = sld [smem:[#allocation7 + $0x2]]  ;;  %v51_v2 = vld [vmem:[#allocation3 + $0x1] ss:$4 sm:$0x3]  ;;  %s153_s30 = scalar_lea.vmem %s103_s29, 64 }
  0x20   :  { %s114_s0 = sld [smem:[#allocation7 + $0x3]]  ;;  %v53_v3 = vld [vmem:[#allocation3 + $0x9] ss:$4 sm:$0x3]  ;;  %p154_p10 = scmp.ne.s32.totalorder %s103_s29, %s153_s30 }
  0x21   :  { %v61_v8 = vld [vmem:[#allocation3 + $0x2] ss:$4 sm:$0x3]  ;;  %v63_v9 = vld [vmem:[#allocation3 + $0xa] ss:$4 sm:$0x3]  ;;  %p158_p11 = scmp.lt.s32.totalorder %s103_s29, %s103_s29  ;;  %p159_p12 = scmp.lt.s32.totalorder %s153_s30, %s153_s30 }
  0x22   :  { %v71_v13 = vld [vmem:[#allocation3 + $0x3] ss:$4 sm:$0x3]  ;;  %v73_v14 = vld [vmem:[#allocation3 + $0xb] ss:$4 sm:$0x3] }
  0x23   :  { %v47_v4 = vstv %s46_s23  ;;  %p160_p13 = por %p159_p12, %p158_p11 }
  0x24   :  { %v48_v5 = vmul.f32 %v47_v4, %v43_v0  ;;  %v49_v6 = vmul.f32 %v47_v4, %v45_v1  ;;  %v55_v7 = vstv %s112_s24 }
  0x25   :  { %v56_v10 = vmul.f32 %v55_v7, %v51_v2  ;;  %v57_v11 = vmul.f32 %v55_v7, %v53_v3  ;;  %v65_v12 = vstv %s113_s25  ;;  %p161_p0 = pnand %p160_p13, %p154_p10 }
  0x26   :  { %v66_v17 = vmul.f32 %v65_v12, %v61_v8  ;;  %v67_v18 = vmul.f32 %v65_v12, %v63_v9  ;;  %v75_v19 = vstv %s114_s0 }
  0x27   :  { %v58_v15 = vadd.f32 %v56_v10, %v48_v5  ;;  %v59_v16 = vadd.f32 %v57_v11, %v49_v6  ;;  %v76_v22 = vmul.f32 %v75_v19, %v71_v13  ;;  %v77_v23 = vmul.f32 %v75_v19, %v73_v14 }
  0x29   :  { %v68_v20 = vadd.f32 %v66_v17, %v58_v15  ;;  %v69_v21 = vadd.f32 %v67_v18, %v59_v16 }
  0x2b   :  { %v78_v25 = vadd.f32 %v76_v22, %v68_v20  ;;  %v79_v26 = vadd.f32 %v77_v23, %v69_v21 }
  0x2d   :  { %v82_v27 = vadd.f32 %v81_v24, %v78_v25  ;;  %v83_v28 = vadd.f32 %v81_v24, %v79_v26 }
  0x2f   :  { %v86_v29 = vcombine.low %v82_v27, %v83_v28 }
  0x31   :  { %115 = vst.sshfl [vmem:[#allocation8] sm:$0x33 pattern:$0x75316420] %v86_v29 }
  0x32   :  { %164 = shalt.err (!%p161_p0)
}
  0x33   :  { %105 = dma.vmem_to_hbm [thread:$0]  %s103_s29, 64, %s219_s3, [#allocation5]  }
  0x34   :  { %177 = dma.done.wait [#allocation5], 64  }
  0x35   :  { %178 = vsyncadd [#allocation5], 4294967232 }
  0x36   :  { %109 = vsyncpa [#allocation4], 1 }
  0x37   :  { %110 = vsyncpa [#allocation5], 1 }
  0x38   :  { %111 = vsyncpa [#allocation6], 1 }

</bundles_post_ra>
